<compile_context>
chip_gen: v7x
topology: tpu7x:2x2x1
jax: 0.10.0
libtpu: 0.0.40
codegen_flags: <defaults>
</compile_context>

<pallas_src>
import jax
import jax.numpy as jnp
from jax.experimental import pallas as pl
from jax.experimental.pallas import tpu as pltpu


def _round_up(x, m):
    return (x + m - 1) // m * m


def _cdiv(a, b):
    return -(-a // b)


def _tpu_vmem_info():
    """Returns (vmem_capacity_bytes, treat_as_small_vmem_multicore_chip)."""
    try:
        info = pltpu.get_tpu_info()
        cap = int(info.vmem_capacity_bytes)
        # v7x: 64 MiB VMEM per TensorCore, 2 TCs/chip -> shape grid for megacore.
        # v5e/v6e: 128 MiB, single TC -> no forced splitting.
        return cap, cap <= (64 << 20)
    except Exception:
        return 64 << 20, False  # conservative default if the query is unavailable


def _plan_tiles(B, S, H, itemsize, budget, multicore):
    """Pick (tb, ts, th) block sizes; lstm tile (VMEM footprint) stays <= budget."""
    Hp = _round_up(H, 128)
    row_bytes = _round_up(S, 8) * Hp * itemsize  # one batch row, full (S, H) slab
    b8 = _round_up(B, 8)

    if 8 * row_bytes <= budget:
        # ---- common case: full (S, H) slab per batch row fits --------------
        ts, th = S, H
        tb = min(b8, max(8, (budget // row_bytes) // 8 * 8))

        if multicore and (b8 // 8) >= 4:
            # v7x megacore shaping: aim for >= 4 grid steps (>= 2 pipelined
            # iterations per TensorCore), but keep tiles >= ~8 MiB.
            tb_floor = max(8, ((8 << 20) // row_bytes) // 8 * 8)
            tb = min(tb, max(_round_up(_cdiv(b8, 4), 8), tb_floor))
            nb0 = _cdiv(B, tb)
            if nb0 > 1 and nb0 % 2 == 1:
                # prefer an even step count so both TCs get equal work
                tb_even = _round_up(_cdiv(B, nb0 + 1), 8)
                if tb_even >= 8 and _cdiv(B, tb_even) % 2 == 0:
                    tb = tb_even

        if multicore and _cdiv(B, tb) == 1 and Hp >= 1024:
            # 1-step grid would leave one v7x TensorCore idle: split the hidden
            # axis into lane-dense chunks (>= 512 lanes) so both cores stream.
            th = _round_up(_cdiv(Hp, 2), 128)
    else:
        # ---- long-sequence / huge-hidden fallback ---------------------------
        # tb = 8, chunk the seq axis (reduction grid + f32 accumulator); chunk
        # the hidden axis too if even a 128-wide seq chunk does not fit.
        tb = 8
        ts_fit = (budget // (8 * Hp * itemsize)) // 128 * 128
        if ts_fit >= 128:
            ts, th = min(ts_fit, _round_up(S, 128)), H
        else:
            ts = 128
            th = min(Hp, max(128, (budget // (8 * 128 * itemsize)) // 128 * 128))
    return tb, ts, th


def _make_kernel(s_total, ts, mask_s):
    def kernel(lstm_ref, attn_ref, out_ref, acc_ref):
        s = pl.program_id(2)

        @pl.when(s == 0)
        def _init():
            acc_ref[...] = jnp.zeros_like(acc_ref)

        x = lstm_ref[...].astype(jnp.float32)   # (tb, ts, th)
        w = attn_ref[...].astype(jnp.float32)   # (tb, ts) — S on the lane axis
        if mask_s:
            # Ragged final seq chunk: Pallas pads input blocks with unspecified
            # data, so zero both operands past the true sequence length.
            seq = s * ts + jax.lax.broadcasted_iota(jnp.int32, w.shape, 1)
            valid = seq < s_total
            w = jnp.where(valid, w, 0.0)
            x = jnp.where(valid[:, :, None], x, 0.0)

        # VPU multiply + sublane-reduce (kept off the MXU on purpose).
        acc_ref[...] += jnp.sum(x * w[:, :, None], axis=1)

        @pl.when(s == pl.num_programs(2) - 1)
        def _store():
            out_ref[...] = acc_ref[...].astype(out_ref.dtype)

    return kernel


def context_vector(lstm_output, attention_weights, *, per_tile_budget_bytes=None):
    """Pallas equivalent of ContextVector.forward.

    lstm_output:        (B, S, H)
    attention_weights:  (B, S, 1)
    returns:            (B, H), same dtype as lstm_output
    """
    B, S, H = lstm_output.shape
    assert attention_weights.shape == (B, S, 1)
    dtype = lstm_output.dtype
    itemsize = jnp.dtype(dtype).itemsize

    # (B, S, 1) -> (B, S): trivial squeeze, keeps S lane-dense.
    attn = attention_weights.reshape(B, S)

    vmem_cap, multicore = _tpu_vmem_info()
    if per_tile_budget_bytes is None:
        # Budget the lstm tile so that double-buffered inputs + the f32 product
        # transient + headroom fit the per-generation VMEM capacity:
        #   2*tile + tile*(4/itemsize) <= ~80% cap - 8 MiB
        usable = (vmem_cap * 4) // 5 - (8 << 20)
        budget = max(2 << 20, usable * itemsize // (2 * itemsize + 4))
    else:
        budget = int(per_tile_budget_bytes)

    tb, ts, th = _plan_tiles(B, S, H, itemsize, budget, multicore)
    nb, nh, ns = _cdiv(B, tb), _cdiv(H, th), _cdiv(S, ts)
    mask_s = (S % ts) != 0  # only the reduction (seq) axis needs in-kernel masking

    # Explicit VMEM budget: double-buffered tiles + f32 accumulator + f32
    # product transient + headroom (lane/sublane padding accounted for).
    lstm_tile = tb * _round_up(ts, 8) * _round_up(th, 128) * itemsize
    attn_tile = tb * _round_up(ts, 128) * itemsize
    out_tile = tb * _round_up(th, 128) * itemsize
    acc_tile = tb * _round_up(th, 128) * 4
    prod_tile = tb * _round_up(ts, 8) * _round_up(th, 128) * 4
    vmem_limit = min(
        vmem_cap,
        2 * (lstm_tile + attn_tile + out_tile) + acc_tile + prod_tile + (4 << 20),
    )

    out = pl.pallas_call(
        _make_kernel(S, ts, mask_s),
        out_shape=jax.ShapeDtypeStruct((B, H), dtype),
        grid_spec=pltpu.PrefetchScalarGridSpec(
            num_scalar_prefetch=0,
            grid=(nb, nh, ns),
            in_specs=[
                pl.BlockSpec((tb, ts, th), lambda b, h, s: (b, s, h)),
                pl.BlockSpec((tb, ts), lambda b, h, s: (b, s)),
            ],
            out_specs=pl.BlockSpec((tb, th), lambda b, h, s: (b, h)),
            scratch_shapes=[pltpu.VMEM((tb, th), jnp.float32)],
        ),
        compiler_params=pltpu.CompilerParams(
            dimension_semantics=("parallel", "parallel", "arbitrary"),
            vmem_limit_bytes=int(vmem_limit),
        ),
        cost_estimate=pl.CostEstimate(
            flops=2 * B * S * H,
            transcendentals=0,
            bytes_accessed=itemsize * (B * S * H + B * S + B * H),
        ),
    )(lstm_output, attn)

    return out


def _reference(lstm_output, attention_weights):
    return jnp.sum(lstm_output * attention_weights, axis=1)


if __name__ == "__main__":
    key = jax.random.PRNGKey(0)

    def run_case(B, S, H, case_key, **kw):
        k1, k2 = jax.random.split(case_key)
        lstm_output = jax.random.normal(k1, (B, S, H), dtype=jnp.float32)
        logits = jax.random.normal(k2, (B, S), dtype=jnp.float32)
        attention_weights = jax.nn.softmax(logits, axis=1)[:, :, None]
        out = jax.block_until_ready(context_vector(lstm_output, attention_weights, **kw))
        ref = _reference(lstm_output, attention_weights)
        assert out.shape == (B, H)
        assert jnp.allclose(out, ref, atol=1e-5, rtol=1e-5), (B, S, H)

    k0, k1, k2 = jax.random.split(key, 3)
    # Primary small example consistent with the module (batch=2, seq=8, hidden=32).
    run_case(2, 8, 32, k0)
    # Ragged batch block + hidden not a multiple of 128 (no wrapper-side padding).
    run_case(5, 12, 160, k1)
    # Force the long-sequence reduction-grid fallback (masked ragged seq chunk).
    run_case(4, 300, 128, k2, per_tile_budget_bytes=64 * 1024)

    print("KERNEL_OK")
</pallas_src>

<mosaic_0001>
module attributes {stable_mosaic.version = 11 : i64} {
  func.func @kernel(%arg0: i32, %arg1: i32, %arg2: i32, %arg3: memref<8x8x32xf32, #tpu.memory_space<vmem>>, %arg4: memref<8x8xf32, #tpu.memory_space<vmem>>, %arg5: memref<8x32xf32, #tpu.memory_space<vmem>>, %arg6: memref<8x32xf32, #tpu.memory_space<vmem>>) attributes {dimension_semantics = [#tpu.dimension_semantics<parallel>, #tpu.dimension_semantics<parallel>, #tpu.dimension_semantics<arbitrary>], iteration_bounds = array<i64: 1, 1, 1>, scalar_prefetch = 0 : i64, scratch_operands = 1 : i64, tpu.core_type = #tpu.core_type<tc>, window_params = [{transform_indices = @transform_0, window_bounds = array<i64: 8, 8, 32>}, {transform_indices = @transform_1, window_bounds = array<i64: 8, 8>}, {transform_indices = @transform_2, window_bounds = array<i64: 8, 32>}]} {
    %c0_i32 = arith.constant 0 : i32
    %0 = arith.cmpi eq, %arg2, %c0_i32 : i32
    %1 = arith.extui %0 : i1 to i32
    %c0_i32_0 = arith.constant 0 : i32
    %2 = arith.cmpi ne, %1, %c0_i32_0 : i32
    scf.if %2 {
      %cst_11 = arith.constant 0.000000e+00 : f32
      %15 = vector.broadcast %cst_11 : f32 to vector<8x32xf32>
      %c0_12 = arith.constant 0 : index
      %c0_13 = arith.constant 0 : index
      %16 = vector.load %arg6[%c0_12, %c0_13] : memref<8x32xf32, #tpu.memory_space<vmem>>, vector<8x32xf32>
      tpu.vector_store %arg6[%c0_12, %c0_13], %15 {strides = array<i32>} : memref<8x32xf32, #tpu.memory_space<vmem>>, vector<8x32xf32>,
    } else {
    }
    %c0 = arith.constant 0 : index
    %c0_1 = arith.constant 0 : index
    %c0_2 = arith.constant 0 : index
    %3 = vector.load %arg3[%c0, %c0_1, %c0_2] : memref<8x8x32xf32, #tpu.memory_space<vmem>>, vector<8x8x32xf32>
    %c0_3 = arith.constant 0 : index
    %c0_4 = arith.constant 0 : index
    %4 = vector.load %arg4[%c0_3, %c0_4] : memref<8x8xf32, #tpu.memory_space<vmem>>, vector<8x8xf32>
    %c0_5 = arith.constant 0 : index
    %c0_6 = arith.constant 0 : index
    %5 = vector.load %arg6[%c0_5, %c0_6] : memref<8x32xf32, #tpu.memory_space<vmem>>, vector<8x32xf32>
    %6 = vector.shape_cast %4 : vector<8x8xf32> to vector<8x8x1xf32>
    %7 = vector.broadcast %6 : vector<8x8x1xf32> to vector<8x8x32xf32>
    %8 = arith.mulf %3, %7 : vector<8x8x32xf32>
    %cst = arith.constant dense<0.000000e+00> : vector<8x32xf32>
    %9 = vector.multi_reduction <add>, %8, %cst [1] : vector<8x8x32xf32> to vector<8x32xf32>
    %10 = arith.addf %5, %9 : vector<8x32xf32>
    %c0_7 = arith.constant 0 : index
    %c0_8 = arith.constant 0 : index
    %11 = vector.load %arg6[%c0_7, %c0_8] : memref<8x32xf32, #tpu.memory_space<vmem>>, vector<8x32xf32>
    tpu.vector_store %arg6[%c0_7, %c0_8], %10 {strides = array<i32>} : memref<8x32xf32, #tpu.memory_space<vmem>>, vector<8x32xf32>,
    %c0_i32_9 = arith.constant 0 : i32
    %12 = arith.cmpi eq, %arg2, %c0_i32_9 : i32
    %13 = arith.extui %12 : i1 to i32
    %c0_i32_10 = arith.constant 0 : i32
    %14 = arith.cmpi ne, %13, %c0_i32_10 : i32
    scf.if %14 {
      %c0_11 = arith.constant 0 : index
      %c0_12 = arith.constant 0 : index
      %15 = vector.load %arg6[%c0_11, %c0_12] : memref<8x32xf32, #tpu.memory_space<vmem>>, vector<8x32xf32>
      %c0_13 = arith.constant 0 : index
      %c0_14 = arith.constant 0 : index
      %16 = vector.load %arg5[%c0_13, %c0_14] : memref<8x32xf32, #tpu.memory_space<vmem>>, vector<8x32xf32>
      tpu.vector_store %arg5[%c0_13, %c0_14], %15 {strides = array<i32>} : memref<8x32xf32, #tpu.memory_space<vmem>>, vector<8x32xf32>,
    } else {
    }
    return
  }
  func.func @transform_0(%arg0: i32, %arg1: i32, %arg2: i32) -> (i32, i32, i32) {
    %c0_i32 = arith.constant 0 : i32
    return %arg0, %arg2, %arg1 : i32, i32, i32
  }
  func.func @transform_1(%arg0: i32, %arg1: i32, %arg2: i32) -> (i32, i32) {
    %c0_i32 = arith.constant 0 : i32
    return %arg0, %arg2 : i32, i32
  }
  func.func @transform_2(%arg0: i32, %arg1: i32, %arg2: i32) -> (i32, i32) {
    %c0_i32 = arith.constant 0 : i32
    return %arg0, %arg1 : i32, i32
  }
}

</mosaic_0001>

<bundles_post_ra>
// kernel: tpu_custom_call.1
= control target key start
LH: loop header
LB: loop body
LE: loop exit
PB: predicated region body
PF: predicated region fallthrough
CT: control target
= control target key end

     0   :  { %7 = vsyncpa [#allocation4], 0  ;;  %s325_s0 = inlined_call_operand.hbm [shape: f32[2,8,32], index: 0, kind: input, shape index: {}]   ;;  %s326_s1 = inlined_call_operand.vmem [shape: f32[2,8], index: 1, kind: input, shape index: {}]   ;;  %s327_s2 = inlined_call_operand.hbm [shape: f32[2,32], index: 2, kind: output, shape index: {}]  }
   0x1   :  { %8 = vsyncpa [#allocation5], 0 }
   0x2   :  { %13 = vsyncadd [#allocation4], 768  ;;  %s265_s9 = smov [#allocation3]   ;;  %s217_s13 = scalar_lea.hbm %s325_s0, 256 }
   0x3   :  { %s14_s10 = sshll.u32 %s265_s9, 4  ;;  %p218_p0 = scmp.ne.s32.totalorder %s325_s0, %s217_s13  ;;  %s15_s10 = int_to_ptr.vmem [resolvable:$true] %s14_s10 }
   0x4   :  { %p221_p1 = scmp.lt.u32.totalorder %s217_s13, %s325_s0 }
   0x6   :  { %p223_p2 = pnand %p221_p1, %p218_p0 }
   0x8   :  { %226 = shalt.err (!%p223_p2)
}
   0x9   :  { %s227_s18 = scalar_lea.vmem %s15_s10, 256  ;;  %s231_s19 = scalar_lea.vmem %s15_s10, 1024 }
   0xa   :  { %p228_p3 = scmp.ne.s32.totalorder %s15_s10, %s227_s18  ;;  %p232_p4 = scmp.lt.s32.totalorder %s15_s10, %s15_s10 }
   0xb   :  { %p233_p5 = scmp.lt.s32.totalorder %s231_s19, %s227_s18 }
   0xd   :  { %p234_p6 = por %p233_p5, %p232_p4 }
   0xf   :  { %p235_p7 = pnand %p234_p6, %p228_p3 }
  0x11   :  { %238 = shalt.err (!%p235_p7)
}
  0x12   :  { %s266_s20 = smov 128   ;;  %s267_s21 = smov 8  }
  0x13   :  { %20 = dma.hbm_to_vmem [thread:$0]  %s325_s0, 256, %s15_s10, [#allocation4], %s266_s20, %s266_s20, %s267_s21  }
  0x14   :  { %261 = dma.done.wait [#allocation4], 1024  }
  0x15   :  { %262 = vsyncadd [#allocation4], 4294966272  ;;  %v42_v0 = vlaneseq  ;;  %v40_v6 = vld [vmem:[%s326_s1] sm:$0xff]  ;;  %vm30_vm0 = vcmask 261120   ;;  %v268_v19 = vmov 0.0   ;;  %v34_v20 = vld [vmem:[#allocation3 + $0x10] sm:$0xff] }
  0x16   :  { %31 = vst.msk [vmem:[#allocation2] sm:$0xff] %vm30_vm0, %v268_v19  ;;  %v32_v21 = vld [vmem:[#allocation3] sm:$0xff]  ;;  %v35_v26 = vld [vmem:[#allocation3 + $0x18] sm:$0xff]  ;;  %v33_v27 = vld [vmem:[#allocation3 + $0x8] sm:$0xff]  ;;  %vm171_vm1 = vcmask 1041409   ;;  %vm173_vm2 = vcmask 1042434  }
  0x17   :  { %v43_v1 = vshrl.u32 %v42_v0, 7  ;;  %v37_v38 = vld [vmem:[#allocation3 + $0x28] sm:$0xff]  ;;  %v36_v39 = vld [vmem:[#allocation3 + $0x20] sm:$0xff]  ;;  %v39_v54 = vld [vmem:[#allocation3 + $0x38] sm:$0xff]  ;;  %vm175_vm3 = vcmask 1043459   ;;  %vm177_vm4 = vcmask 1044484  }
  0x18   :  { %v38_v55 = vld [vmem:[#allocation3 + $0x30] sm:$0xff]  ;;  %vm179_vm5 = vcmask 1045509   ;;  %vm181_vm6 = vcmask 1046534   ;;  %vm183_vm7 = vcmask 1047559  }
  0x19   :  { %v58_v2 = vsub.s32 2, %v43_v1  ;;  %v44_v3 = vsub.s32 0, %v43_v1  ;;  %v65_v4 = vsub.s32 3, %v43_v1  ;;  %v51_v5 = vsub.s32 1, %v43_v1 }
  0x1a   :  { %v79_v11 = vsub.s32 5, %v43_v1  ;;  %v72_v12 = vsub.s32 4, %v43_v1  ;;  %v93_v15 = vsub.s32 7, %v43_v1  ;;  %v86_v16 = vsub.s32 6, %v43_v1 }
  0x1b   :  { %v59_v7 = vrot.slane %v40_v6, %v58_v2  ;;  %v45_v8 = vrot.slane %v40_v6, %v44_v3  ;;  %v66_v9 = vrot.slane %v40_v6, %v65_v4  ;;  %v52_v10 = vrot.slane %v40_v6, %v51_v5 }
  0x1c   :  { %v80_v13 = vrot.slane %v40_v6, %v79_v11  ;;  %v73_v14 = vrot.slane %v40_v6, %v72_v12  ;;  %v94_v17 = vrot.slane %v40_v6, %v93_v15  ;;  %v87_v18 = vrot.slane %v40_v6, %v86_v16 }
  0x1d   :  { %61 = vbcast.lane.b32.xlu1 %v59_v7, 256  ;;  %47 = vbcast.lane.b32.xlu0 %v45_v8, 256 }
  0x21   :  { %68 = vbcast.lane.b32.xlu1 %v66_v9, 256  ;;  %54 = vbcast.lane.b32.xlu0 %v52_v10, 256 }
  0x25   :  { %82 = vbcast.lane.b32.xlu1 %v80_v13, 256  ;;  %75 = vbcast.lane.b32.xlu0 %v73_v14, 256 }
  0x29   :  { %96 = vbcast.lane.b32.xlu1 %v94_v17, 256  ;;  %89 = vbcast.lane.b32.xlu0 %v87_v18, 256 }
  0x8f   :  { %v62_v22 = vpop.permute.xlu1 %61  ;;  %v48_v23 = vpop.permute.xlu0 %47 }
  0x90   :  { %v100_v24 = vmul.f32 %v62_v22, %v34_v20  ;;  %v98_v25 = vmul.f32 %v48_v23, %v32_v21 }
  0x92   :  { %v121_v28 = vsel %vm30_vm0, %v100_v24, 0.0  ;;  %v107_v29 = vsel %vm30_vm0, %v98_v25, 0.0 }
  0x93   :  { %v122_v30 = vrot.slane %v121_v28, 4  ;;  %v108_v31 = vrot.slane %v107_v29, 4  ;;  %v69_v32 = vpop.permute.xlu1 %68  ;;  %v55_v33 = vpop.permute.xlu0 %54 }
  0x94   :  { %v101_v34 = vmul.f32 %v69_v32, %v35_v26  ;;  %v99_v35 = vmul.f32 %v55_v33, %v33_v27 }
  0x95   :  { %v123_v36 = vadd.f32 %v122_v30, %v121_v28  ;;  %v109_v37 = vadd.f32 %v108_v31, %v107_v29 }
  0x96   :  { %v128_v40 = vsel %vm30_vm0, %v101_v34, 0.0  ;;  %v114_v41 = vsel %vm30_vm0, %v99_v35, 0.0 }
  0x97   :  { %v124_v42 = vrot.slane %v123_v36, 2  ;;  %v110_v43 = vrot.slane %v109_v37, 2  ;;  %v129_v44 = vrot.slane %v128_v40, 4  ;;  %v115_v45 = vrot.slane %v114_v41, 4  ;;  %v83_v46 = vpop.permute.xlu1 %82  ;;  %v76_v47 = vpop.permute.xlu0 %75 }
  0x98   :  { %v103_v48 = vmul.f32 %v83_v46, %v37_v38  ;;  %v102_v49 = vmul.f32 %v76_v47, %v36_v39 }
  0x99   :  { %v125_v50 = vadd.f32 %v124_v42, %v123_v36  ;;  %v111_v51 = vadd.f32 %v110_v43, %v109_v37  ;;  %v130_v52 = vadd.f32 %v129_v44, %v128_v40  ;;  %v116_v53 = vadd.f32 %v115_v45, %v114_v41  ;;  %v41_v40 = vld [vmem:[#allocation2] sm:$0xff] }
  0x9a   :  { %v142_v56 = vsel %vm30_vm0, %v103_v48, 0.0  ;;  %v135_v57 = vsel %vm30_vm0, %v102_v49, 0.0 }
  0x9b   :  { %v131_v58 = vrot.slane %v130_v52, 2  ;;  %v117_v59 = vrot.slane %v116_v53, 2  ;;  %v97_v60 = vpop.permute.xlu1 %96  ;;  %v90_v61 = vpop.permute.xlu0 %89  ;;  %v143_v62 = vrot.slane %v142_v56, 4  ;;  %v136_v63 = vrot.slane %v135_v57, 4 }
  0x9c   :  { %v105_v0 = vmul.f32 %v97_v60, %v39_v54  ;;  %v104_v1 = vmul.f32 %v90_v61, %v38_v55  ;;  %v126_v2 = vrot.slane %v125_v50, 1  ;;  %v112_v3 = vrot.slane %v111_v51, 1 }
  0x9d   :  { %v132_v4 = vadd.f32 %v131_v58, %v130_v52  ;;  %v118_v5 = vadd.f32 %v117_v59, %v116_v53  ;;  %v144_v6 = vadd.f32 %v143_v62, %v142_v56  ;;  %v137_v7 = vadd.f32 %v136_v63, %v135_v57 }
  0x9e   :  { %v156_v8 = vsel %vm30_vm0, %v105_v0, 0.0  ;;  %v149_v9 = vsel %vm30_vm0, %v104_v1, 0.0  ;;  %v113_v16 = vadd.f32 %v112_v3, %v111_v51  ;;  %v127_v20 = vadd.f32 %v126_v2, %v125_v50 }
  0x9f   :  { %v133_v10 = vrot.slane %v132_v4, 1  ;;  %v119_v11 = vrot.slane %v118_v5, 1  ;;  %v157_v12 = vrot.slane %v156_v8, 4  ;;  %v150_v13 = vrot.slane %v149_v9, 4 }
  0xa0   :  { %v145_v14 = vrot.slane %v144_v6, 2  ;;  %v138_v15 = vrot.slane %v137_v7, 2 }
  0xa1   :  { %v120_v17 = vadd.f32 %v119_v11, %v118_v5  ;;  %v158_v18 = vadd.f32 %v157_v12, %v156_v8  ;;  %v151_v19 = vadd.f32 %v150_v13, %v149_v9  ;;  %v134_v23 = vadd.f32 %v133_v10, %v132_v4 }
  0xa2   :  { %v146_v21 = vadd.f32 %v145_v14, %v144_v6  ;;  %v139_v22 = vadd.f32 %v138_v15, %v137_v7 }
  0xa3   :  { %v172_v24 = vsel %vm171_vm1, %v120_v17, %v113_v16  ;;  %v159_v25 = vrot.slane %v158_v18, 2  ;;  %v152_v26 = vrot.slane %v151_v19, 2 }
  0xa4   :  { %v174_v27 = vsel %vm173_vm2, %v127_v20, %v172_v24  ;;  %v147_v28 = vrot.slane %v146_v21, 1  ;;  %v140_v29 = vrot.slane %v139_v22, 1 }
  0xa5   :  { %v176_v30 = vsel %vm175_vm3, %v134_v23, %v174_v27  ;;  %v160_v31 = vadd.f32 %v159_v25, %v158_v18  ;;  %v153_v32 = vadd.f32 %v152_v26, %v151_v19 }
  0xa6   :  { %v148_v33 = vadd.f32 %v147_v28, %v146_v21  ;;  %v141_v34 = vadd.f32 %v140_v29, %v139_v22 }
  0xa7   :  { %v161_v35 = vrot.slane %v160_v31, 1  ;;  %v154_v36 = vrot.slane %v153_v32, 1 }
  0xa8   :  { %v178_v37 = vsel %vm177_vm4, %v141_v34, %v176_v30 }
  0xa9   :  { %v162_v38 = vadd.f32 %v161_v35, %v160_v31  ;;  %v155_v39 = vadd.f32 %v154_v36, %v153_v32  ;;  %v180_v41 = vsel %vm179_vm5, %v148_v33, %v178_v37 }
  0xab   :  { %v182_v42 = vsel %vm181_vm6, %v155_v39, %v180_v41 }
  0xac   :  { %v184_v43 = vsel %vm183_vm7, %v162_v38, %v182_v42 }
  0xad   :  { %v186_v44 = vadd.f32 %v184_v43, %v41_v40 }
  0xaf   :  { %187 = vst.msk [vmem:[#allocation2] sm:$0xff] %vm30_vm0, %v186_v44 }
  0xb6   :  { %v191_v45 = vld [vmem:[#allocation2] sm:$0xff] }
  0xb7   :  { %192 = vst.msk [vmem:[#allocation6] sm:$0xff] %vm30_vm0, %v191_v45 }
  0xb8   :  { %197 = vsyncadd [#allocation5], 96  ;;  %s269_s0 = smov [#allocation6]  }
  0xb9   :  { %s198_s1 = sshll.u32 %s269_s0, 4  ;;  %s199_s1 = int_to_ptr.vmem [resolvable:$true] %s198_s1 }
  0xba   :  { %s239_s26 = scalar_lea.vmem %s199_s1, 32  ;;  %s243_s27 = scalar_lea.vmem %s199_s1, 128 }
  0xbb   :  { %p240_p8 = scmp.ne.s32.totalorder %s199_s1, %s239_s26  ;;  %p244_p9 = scmp.lt.s32.totalorder %s199_s1, %s199_s1 }
  0xbc   :  { %p245_p10 = scmp.lt.s32.totalorder %s243_s27, %s239_s26 }
  0xbe   :  { %p246_p11 = por %p245_p10, %p244_p9 }
  0xc0   :  { %p247_p12 = pnand %p246_p11, %p240_p8 }
  0xc2   :  { %250 = shalt.err (!%p247_p12)
}
  0xc3   :  { %s251_s30 = scalar_lea.hbm %s327_s2, 32 }
  0xc4   :  { %p252_p13 = scmp.ne.s32.totalorder %s327_s2, %s251_s30  ;;  %p255_p0 = scmp.lt.u32.totalorder %s251_s30, %s327_s2 }
  0xc6   :  { %p257_p1 = pnand %p255_p0, %p252_p13 }
  0xc8   :  { %260 = shalt.err (!%p257_p1)
}
  0xc9   :  { %s270_s7 = smov 32   ;;  %s271_s8 = smov 2  }
  0xca   :  { %204 = dma.vmem_to_hbm [thread:$0]  %s199_s1, 32, %s327_s2, [#allocation5], %s270_s7, %s270_s7, %s271_s8  }
  0xcb   :  { %263 = dma.done.wait [#allocation5], 128  }
  0xcc   :  { %264 = vsyncadd [#allocation5], 4294967168 }
  0xcd   :  { %208 = vsyncpa [#allocation4], 1 }
  0xce   :  { %209 = vsyncpa [#allocation5], 1 }

</bundles_post_ra>
